<compile_context>
chip_gen: v7x
topology: tpu7x:2x2x1
jax: 0.10.0
libtpu: 0.0.40
codegen_flags: <defaults>
</compile_context>

<pallas_src>
import functools

import jax
import jax.numpy as jnp
from jax.experimental import pallas as pl
from jax.experimental.pallas import tpu as pltpu


# ----------------------------------------------------------------------------
# Kernel: one (batch, output-row-parity) step of the transposed conv.
# ----------------------------------------------------------------------------
def _upsample_kernel(x_ref, w_ref, bias_ref, o_ref, *, H, W, Cin, Cout):
    ph = pl.program_id(1)                        # output-row parity (0 or 1)
    bias = bias_ref[...].astype(jnp.float32)     # (1, Cout)

    for pw in range(2):                          # output-col parity (static)
        # K-stack the 4 taps (a, b): column block q = a*2 + b holds the window
        # shifted by (ph + a) rows and (pw + b) cols.  The width shift is baked
        # into the pre-shifted input layout (axis 1), so the only in-kernel
        # slice is along the untiled H axis -> layout-free reshape.
        taps = []
        for a in range(2):
            for b in range(2):
                win = x_ref[0, pw + b, pl.ds(ph + a, H), :, :]   # (H, W, Cin)
                taps.append(win.reshape(H * W, Cin))
        act = jnp.concatenate(taps, axis=-1)                     # (H*W, 4*Cin)
        res = jnp.dot(act, w_ref[ph, pw, :, :],                  # (H*W, Cout)
                      preferred_element_type=jnp.float32)
        res = (res + bias).astype(o_ref.dtype).reshape(H, W, Cout)
        # lane-aligned, 128-wide slab -> unmasked vector stores
        o_ref[0, :, 0, :, pw * Cout:(pw + 1) * Cout] = res


# ----------------------------------------------------------------------------
# Host-side weight re-arrangement (done once under jit).
# torch ConvTranspose2d weight (Cin, Cout, 4, 4) -> (2, 2, 4*Cin, Cout) bf16,
# rows [q*Cin:(q+1)*Cin] of [ph, pw] = w[:, :, 3-ph-2a, 3-pw-2b], q = a*2 + b.
# ----------------------------------------------------------------------------
def _make_stacked_weights(w):
    rows = []
    for ph in range(2):
        cols = []
        for pw in range(2):
            blocks = [w[:, :, 3 - ph - 2 * a, 3 - pw - 2 * b]
                      for a in range(2) for b in range(2)]
            cols.append(jnp.concatenate(blocks, axis=0))        # (4*Cin, Cout)
        rows.append(jnp.stack(cols, axis=0))                    # (2, 4*Cin, Cout)
    return jnp.stack(rows, axis=0).astype(jnp.bfloat16)         # (2, 2, 4*Cin, Cout)


# ----------------------------------------------------------------------------
# Upsample forward: x NCHW -> NCHW with doubled spatial dims.  t is ignored
# (kept only to match the PyTorch module signature).
# ----------------------------------------------------------------------------
def upsample_forward(params, x, t):
    del t  # unused, as in the reference module
    B, Cin, H, W = x.shape
    Cout = params["weight"].shape[1]
    Hp = H + 2

    # Layout assumptions for lane-dense stores / layout-free reshapes.
    assert Cin % 128 == 0 and Cout % 128 == 0, "channels must be multiples of 128"
    assert W % 8 == 0, "width must be a multiple of 8 (sublane)"

    # NHWC + 1px zero halo, then the three width shifts: xs[b, s, h, w, c]
    # = xpad[b, h, w + s, c].  bf16 operands (exact products, f32 accumulation).
    xpad = jnp.pad(jnp.transpose(x, (0, 2, 3, 1)).astype(jnp.bfloat16),
                   ((0, 0), (1, 1), (1, 1), (0, 0)))             # (B, Hp, Wp, Cin)
    xs = jnp.stack([xpad[:, :, s:s + W, :] for s in range(3)], axis=1)

    wstk = _make_stacked_weights(params["weight"])               # (2, 2, 4*Cin, Cout)
    bias = params["bias"].reshape(1, Cout).astype(jnp.float32)

    kern = functools.partial(_upsample_kernel, H=H, W=W, Cin=Cin, Cout=Cout)
    phases = pl.pallas_call(
        kern,
        out_shape=jax.ShapeDtypeStruct((B, H, 2, W, 2 * Cout), jnp.float32),
        grid=(B, 2),
        in_specs=[
            # pre-shifted padded image: block index constant across ph -> one DMA / batch
            pl.BlockSpec((1, 3, Hp, W, Cin), lambda b, ph: (b, 0, 0, 0, 0)),
            # full K-stacked weights, constant index -> VMEM-resident (one DMA total)
            pl.BlockSpec((2, 2, 4 * Cin, Cout), lambda b, ph: (0, 0, 0, 0)),
            pl.BlockSpec((1, Cout), lambda b, ph: (0, 0)),
        ],
        out_specs=pl.BlockSpec((1, H, 1, W, 2 * Cout),
                               lambda b, ph: (b, 0, ph, 0, 0)),
        compiler_params=pltpu.CompilerParams(
            dimension_semantics=("parallel", "parallel"),
            vmem_limit_bytes=64 * 1024 * 1024),
    )(xs, wstk, bias)

    # (B, H, 2, W, 2*Cout) == (B, H, 2, W, 2, Cout) -> (B, 2H, 2W, Cout): pure view.
    y = phases.reshape(B, 2 * H, 2 * W, Cout)
    return jnp.transpose(y, (0, 3, 1, 2))        # NCHW, as the PyTorch module returns


# ----------------------------------------------------------------------------
# Direct f32 reference (scatter formulation of ConvTranspose2d k=4, s=2, p=1).
# ----------------------------------------------------------------------------
def conv_transpose_ref(x, w, bias):
    B, Ci, H, W = x.shape
    Co = w.shape[1]
    Ho, Wo = 2 * H, 2 * W
    out = jnp.zeros((B, Co, Ho + 2, Wo + 2), jnp.float32)
    for kh in range(4):
        for kw in range(4):
            contrib = jnp.einsum("bihw,io->bohw", x, w[:, :, kh, kw])
            out = out.at[:, :, kh:kh + 2 * H:2, kw:kw + 2 * W:2].add(contrib)
    return out[:, :, 1:1 + Ho, 1:1 + Wo] + bias[None, :, None, None]


# ----------------------------------------------------------------------------
if __name__ == "__main__":
    # n_channels=128 keeps the kernel output lane-dense; 8x8 spatial -> 16x16.
    B, C, H, W, TIME_CH = 2, 128, 8, 8, 32

    key = jax.random.PRNGKey(0)
    kx, kt, kw_, kb = jax.random.split(key, 4)
    x = jax.random.normal(kx, (B, C, H, W), jnp.float32)
    t = jax.random.normal(kt, (B, TIME_CH), jnp.float32)   # unused (matches spec)
    params = {
        "weight": 0.05 * jax.random.normal(kw_, (C, C, 4, 4), jnp.float32),
        "bias": 0.05 * jax.random.normal(kb, (C,), jnp.float32),
    }

    fwd = jax.jit(upsample_forward)
    out = fwd(params, x, t)
    jax.block_until_ready(out)

    assert out.shape == (B, C, 2 * H, 2 * W), out.shape
    assert bool(jnp.all(jnp.isfinite(out)))

    # Correctness check vs a direct reference on the same bf16-quantized operands.
    xq = x.astype(jnp.bfloat16).astype(jnp.float32)
    wq = params["weight"].astype(jnp.bfloat16).astype(jnp.float32)
    ref = conv_transpose_ref(xq, wq, params["bias"])
    err = float(jnp.max(jnp.abs(out - ref)))
    assert err < 5e-3, f"max abs err {err}"

    print("KERNEL_OK")
</pallas_src>

<mosaic_0001>
module attributes {stable_mosaic.version = 11 : i64} {
  func.func @_upsample_kernel(%arg0: i32, %arg1: i32, %arg2: memref<1x3x10x8x128xbf16, #tpu.memory_space<vmem>>, %arg3: memref<2x2x512x128xbf16, #tpu.memory_space<vmem>>, %arg4: memref<1x128xf32, #tpu.memory_space<vmem>>, %arg5: memref<1x8x1x8x256xf32, #tpu.memory_space<vmem>>) attributes {dimension_semantics = [#tpu.dimension_semantics<parallel>, #tpu.dimension_semantics<parallel>], iteration_bounds = array<i64: 2, 2>, scalar_prefetch = 0 : i64, scratch_operands = 0 : i64, tpu.core_type = #tpu.core_type<tc>, window_params = [{transform_indices = @transform_0, window_bounds = array<i64: 1, 3, 10, 8, 128>}, {pipeline_mode = #tpu.pipeline_mode<synchronous>, transform_indices = @transform_1, window_bounds = array<i64: 2, 2, 512, 128>}, {pipeline_mode = #tpu.pipeline_mode<synchronous>, transform_indices = @transform_2, window_bounds = array<i64: 1, 128>}, {transform_indices = @transform_3, window_bounds = array<i64: 1, 8, 1, 8, 256>}]} {
    %c0 = arith.constant 0 : index
    %c0_0 = arith.constant 0 : index
    %0 = vector.load %arg4[%c0, %c0_0] : memref<1x128xf32, #tpu.memory_space<vmem>>, vector<1x128xf32>
    %c0_i32 = arith.constant 0 : i32
    %1 = arith.addi %arg1, %c0_i32 : i32
    %c0_1 = arith.constant 0 : index
    %c0_2 = arith.constant 0 : index
    %2 = arith.index_cast %1 : i32 to index
    %c0_3 = arith.constant 0 : index
    %c0_4 = arith.constant 0 : index
    %3 = vector.load %arg2[%c0_1, %c0_2, %2, %c0_3, %c0_4] : memref<1x3x10x8x128xbf16, #tpu.memory_space<vmem>>, vector<1x1x8x8x128xbf16>
    %4 = vector.shape_cast %3 : vector<1x1x8x8x128xbf16> to vector<8x8x128xbf16>
    %5 = vector.shape_cast %4 : vector<8x8x128xbf16> to vector<64x128xbf16>
    %c0_i32_5 = arith.constant 0 : i32
    %6 = arith.addi %arg1, %c0_i32_5 : i32
    %c0_6 = arith.constant 0 : index
    %c1 = arith.constant 1 : index
    %7 = arith.index_cast %6 : i32 to index
    %c0_7 = arith.constant 0 : index
    %c0_8 = arith.constant 0 : index
    %8 = vector.load %arg2[%c0_6, %c1, %7, %c0_7, %c0_8] : memref<1x3x10x8x128xbf16, #tpu.memory_space<vmem>>, vector<1x1x8x8x128xbf16>
    %9 = vector.shape_cast %8 : vector<1x1x8x8x128xbf16> to vector<8x8x128xbf16>
    %10 = vector.shape_cast %9 : vector<8x8x128xbf16> to vector<64x128xbf16>
    %c1_i32 = arith.constant 1 : i32
    %11 = arith.addi %arg1, %c1_i32 : i32
    %c0_9 = arith.constant 0 : index
    %c0_10 = arith.constant 0 : index
    %12 = arith.index_cast %11 : i32 to index
    %c0_11 = arith.constant 0 : index
    %c0_12 = arith.constant 0 : index
    %13 = vector.load %arg2[%c0_9, %c0_10, %12, %c0_11, %c0_12] : memref<1x3x10x8x128xbf16, #tpu.memory_space<vmem>>, vector<1x1x8x8x128xbf16>
    %14 = vector.shape_cast %13 : vector<1x1x8x8x128xbf16> to vector<8x8x128xbf16>
    %15 = vector.shape_cast %14 : vector<8x8x128xbf16> to vector<64x128xbf16>
    %c1_i32_13 = arith.constant 1 : i32
    %16 = arith.addi %arg1, %c1_i32_13 : i32
    %c0_14 = arith.constant 0 : index
    %c1_15 = arith.constant 1 : index
    %17 = arith.index_cast %16 : i32 to index
    %c0_16 = arith.constant 0 : index
    %c0_17 = arith.constant 0 : index
    %18 = vector.load %arg2[%c0_14, %c1_15, %17, %c0_16, %c0_17] : memref<1x3x10x8x128xbf16, #tpu.memory_space<vmem>>, vector<1x1x8x8x128xbf16>
    %19 = vector.shape_cast %18 : vector<1x1x8x8x128xbf16> to vector<8x8x128xbf16>
    %20 = vector.shape_cast %19 : vector<8x8x128xbf16> to vector<64x128xbf16>
    %21 = tpu.concatenate %5, %10, %15, %20 in 1 : vector<64x128xbf16>, vector<64x128xbf16>, vector<64x128xbf16>, vector<64x128xbf16> -> vector<64x512xbf16>
    %22 = arith.index_cast %arg1 : i32 to index
    %c0_18 = arith.constant 0 : index
    %c0_19 = arith.constant 0 : index
    %c0_20 = arith.constant 0 : index
    %23 = vector.load %arg3[%22, %c0_18, %c0_19, %c0_20] : memref<2x2x512x128xbf16, #tpu.memory_space<vmem>>, vector<1x1x512x128xbf16>
    %24 = vector.shape_cast %23 : vector<1x1x512x128xbf16> to vector<512x128xbf16>
    %cst = arith.constant dense<0.000000e+00> : vector<64x128xf32>
    %25 = tpu.matmul %21, %24, %cst {dimension_numbers = #tpu.dot_dimension_numbers<[1], [0], [0], [1], [0, 0, 1, 1], [], []>} : vector<64x512xbf16>, vector<512x128xbf16>, vector<64x128xf32> -> vector<64x128xf32>
    %26 = vector.broadcast %0 : vector<1x128xf32> to vector<64x128xf32>
    %27 = arith.addf %25, %26 : vector<64x128xf32>
    %28 = vector.shape_cast %27 : vector<64x128xf32> to vector<8x8x128xf32>
    %c0_21 = arith.constant 0 : index
    %c0_22 = arith.constant 0 : index
    %c0_23 = arith.constant 0 : index
    %c0_24 = arith.constant 0 : index
    %c0_25 = arith.constant 0 : index
    %29 = vector.load %arg5[%c0_21, %c0_22, %c0_23, %c0_24, %c0_25] : memref<1x8x1x8x256xf32, #tpu.memory_space<vmem>>, vector<1x8x1x8x128xf32>
    %30 = vector.shape_cast %29 : vector<1x8x1x8x128xf32> to vector<8x8x128xf32>
    %31 = vector.shape_cast %28 : vector<8x8x128xf32> to vector<1x8x1x8x128xf32>
    tpu.vector_store %arg5[%c0_21, %c0_22, %c0_23, %c0_24, %c0_25], %31 {strides = array<i32>} : memref<1x8x1x8x256xf32, #tpu.memory_space<vmem>>, vector<1x8x1x8x128xf32>,
    %c0_i32_26 = arith.constant 0 : i32
    %32 = arith.addi %arg1, %c0_i32_26 : i32
    %c0_27 = arith.constant 0 : index
    %c1_28 = arith.constant 1 : index
    %33 = arith.index_cast %32 : i32 to index
    %c0_29 = arith.constant 0 : index
    %c0_30 = arith.constant 0 : index
    %34 = vector.load %arg2[%c0_27, %c1_28, %33, %c0_29, %c0_30] : memref<1x3x10x8x128xbf16, #tpu.memory_space<vmem>>, vector<1x1x8x8x128xbf16>
    %35 = vector.shape_cast %34 : vector<1x1x8x8x128xbf16> to vector<8x8x128xbf16>
    %36 = vector.shape_cast %35 : vector<8x8x128xbf16> to vector<64x128xbf16>
    %c0_i32_31 = arith.constant 0 : i32
    %37 = arith.addi %arg1, %c0_i32_31 : i32
    %c0_32 = arith.constant 0 : index
    %c2 = arith.constant 2 : index
    %38 = arith.index_cast %37 : i32 to index
    %c0_33 = arith.constant 0 : index
    %c0_34 = arith.constant 0 : index
    %39 = vector.load %arg2[%c0_32, %c2, %38, %c0_33, %c0_34] : memref<1x3x10x8x128xbf16, #tpu.memory_space<vmem>>, vector<1x1x8x8x128xbf16>
    %40 = vector.shape_cast %39 : vector<1x1x8x8x128xbf16> to vector<8x8x128xbf16>
    %41 = vector.shape_cast %40 : vector<8x8x128xbf16> to vector<64x128xbf16>
    %c1_i32_35 = arith.constant 1 : i32
    %42 = arith.addi %arg1, %c1_i32_35 : i32
    %c0_36 = arith.constant 0 : index
    %c1_37 = arith.constant 1 : index
    %43 = arith.index_cast %42 : i32 to index
    %c0_38 = arith.constant 0 : index
    %c0_39 = arith.constant 0 : index
    %44 = vector.load %arg2[%c0_36, %c1_37, %43, %c0_38, %c0_39] : memref<1x3x10x8x128xbf16, #tpu.memory_space<vmem>>, vector<1x1x8x8x128xbf16>
    %45 = vector.shape_cast %44 : vector<1x1x8x8x128xbf16> to vector<8x8x128xbf16>
    %46 = vector.shape_cast %45 : vector<8x8x128xbf16> to vector<64x128xbf16>
    %c1_i32_40 = arith.constant 1 : i32
    %47 = arith.addi %arg1, %c1_i32_40 : i32
    %c0_41 = arith.constant 0 : index
    %c2_42 = arith.constant 2 : index
    %48 = arith.index_cast %47 : i32 to index
    %c0_43 = arith.constant 0 : index
    %c0_44 = arith.constant 0 : index
    %49 = vector.load %arg2[%c0_41, %c2_42, %48, %c0_43, %c0_44] : memref<1x3x10x8x128xbf16, #tpu.memory_space<vmem>>, vector<1x1x8x8x128xbf16>
    %50 = vector.shape_cast %49 : vector<1x1x8x8x128xbf16> to vector<8x8x128xbf16>
    %51 = vector.shape_cast %50 : vector<8x8x128xbf16> to vector<64x128xbf16>
    %52 = tpu.concatenate %36, %41, %46, %51 in 1 : vector<64x128xbf16>, vector<64x128xbf16>, vector<64x128xbf16>, vector<64x128xbf16> -> vector<64x512xbf16>
    %53 = arith.index_cast %arg1 : i32 to index
    %c1_45 = arith.constant 1 : index
    %c0_46 = arith.constant 0 : index
    %c0_47 = arith.constant 0 : index
    %54 = vector.load %arg3[%53, %c1_45, %c0_46, %c0_47] : memref<2x2x512x128xbf16, #tpu.memory_space<vmem>>, vector<1x1x512x128xbf16>
    %55 = vector.shape_cast %54 : vector<1x1x512x128xbf16> to vector<512x128xbf16>
    %cst_48 = arith.constant dense<0.000000e+00> : vector<64x128xf32>
    %56 = tpu.matmul %52, %55, %cst_48 {dimension_numbers = #tpu.dot_dimension_numbers<[1], [0], [0], [1], [0, 0, 1, 1], [], []>} : vector<64x512xbf16>, vector<512x128xbf16>, vector<64x128xf32> -> vector<64x128xf32>
    %57 = vector.broadcast %0 : vector<1x128xf32> to vector<64x128xf32>
    %58 = arith.addf %56, %57 : vector<64x128xf32>
    %59 = vector.shape_cast %58 : vector<64x128xf32> to vector<8x8x128xf32>
    %c0_49 = arith.constant 0 : index
    %c0_50 = arith.constant 0 : index
    %c0_51 = arith.constant 0 : index
    %c0_52 = arith.constant 0 : index
    %c128 = arith.constant 128 : index
    %60 = vector.load %arg5[%c0_49, %c0_50, %c0_51, %c0_52, %c128] : memref<1x8x1x8x256xf32, #tpu.memory_space<vmem>>, vector<1x8x1x8x128xf32>
    %61 = vector.shape_cast %60 : vector<1x8x1x8x128xf32> to vector<8x8x128xf32>
    %62 = vector.shape_cast %59 : vector<8x8x128xf32> to vector<1x8x1x8x128xf32>
    tpu.vector_store %arg5[%c0_49, %c0_50, %c0_51, %c0_52, %c128], %62 {strides = array<i32>} : memref<1x8x1x8x256xf32, #tpu.memory_space<vmem>>, vector<1x8x1x8x128xf32>,
    return
  }
  func.func @transform_0(%arg0: i32, %arg1: i32) -> (i32, i32, i32, i32, i32) {
    %c0_i32 = arith.constant 0 : i32
    %c0_i32_0 = arith.constant 0 : i32
    %c0_i32_1 = arith.constant 0 : i32
    %c0_i32_2 = arith.constant 0 : i32
    %c0_i32_3 = arith.constant 0 : i32
    return %arg0, %c0_i32, %c0_i32_0, %c0_i32_1, %c0_i32_2 : i32, i32, i32, i32, i32
  }
  func.func @transform_1(%arg0: i32, %arg1: i32) -> (i32, i32, i32, i32) {
    %c0_i32 = arith.constant 0 : i32
    %c0_i32_0 = arith.constant 0 : i32
    %c0_i32_1 = arith.constant 0 : i32
    %c0_i32_2 = arith.constant 0 : i32
    %c0_i32_3 = arith.constant 0 : i32
    return %c0_i32, %c0_i32_0, %c0_i32_1, %c0_i32_2 : i32, i32, i32, i32
  }
  func.func @transform_2(%arg0: i32, %arg1: i32) -> (i32, i32) {
    %c0_i32 = arith.constant 0 : i32
    %c0_i32_0 = arith.constant 0 : i32
    %c0_i32_1 = arith.constant 0 : i32
    return %c0_i32, %c0_i32_0 : i32, i32
  }
  func.func @transform_3(%arg0: i32, %arg1: i32) -> (i32, i32, i32, i32, i32) {
    %c0_i32 = arith.constant 0 : i32
    %c0_i32_0 = arith.constant 0 : i32
    %c0_i32_1 = arith.constant 0 : i32
    %c0_i32_2 = arith.constant 0 : i32
    return %arg0, %c0_i32, %arg1, %c0_i32_0, %c0_i32_1 : i32, i32, i32, i32, i32
  }
}

</mosaic_0001>

<bundles_post_ra>
// kernel: upsample_forward.1
= control target key start
LH: loop header
LB: loop body
LE: loop exit
PB: predicated region body
PF: predicated region fallthrough
CT: control target
= control target key end

     0   :  { %s2778_s0 = inlined_call_operand.hbm [shape: bf16[2,3,10,8,128], index: 0, kind: input, shape index: {}]   ;;  %s2779_s1 = inlined_call_operand.hbm [shape: bf16[2,2,512,128], index: 1, kind: input, shape index: {}]   ;;  %s2780_s2 = inlined_call_operand.hbm [shape: f32[1,128], index: 2, kind: input, shape index: {}]   ;;  %s2781_s3 = inlined_call_operand.hbm [shape: f32[2,8,2,8,256], index: 3, kind: output, shape index: {}]  }
   0x1   :  { %2793 = sst [smem:[#allocation16_spill]] %s2779_s1 }
   0x2   :  { %2794 = sst [smem:[#allocation17_spill]] %s2780_s2 }
   0x3   :  { %8 = vsyncpa [#allocation3], 0 }
   0x4   :  { %10 = vsyncpa [#allocation3 + $0x1], 0 }
   0x5   :  { %11 = vsyncpa [#allocation6], 0 }
   0x6   :  { %12 = vsyncpa [#allocation4], 0 }
   0x7   :  { %14 = vsyncpa [#allocation4 + $0x1], 0  ;;  %s2326_s12 = smov 0   ;;  %s2328_s13 = smov 0  }
   0x8   :  { %s2330_s14 = smov 0   ;;  %s2332_s15 = smov 0  }
   0x9   :  { %s2334_s16 = smov 0   ;;  %s2336_s17 = smov 0  }
   0xa   :  { %s2338_s18 = smov 0   ;;  %s2340_s19 = smov 0  }
   0xb   :  { %s2342_s20 = smov 0   ;;  %s2344_s21 = smov 0  }
   0xc   :  { %s2346_s22 = smov 0  }
   0xd LB: > { %2795 = sst [smem:[#allocation12_spill]] %s2255_s12  ;;  %s1450_s23 = sadd.s32 4294967295, %s2295_s22   ;;  %s2295_s22 = sphi %s2346_s22, %s20_s22   ;;  %s2291_s21 = sphi %s2344_s21, %s2829_s21   ;;  %s2287_s20 = sphi %s2342_s20, %s2820_s20   ;;  %s2283_s19 = sphi %s2340_s19, %s2828_s19   ;;  %s2279_s18 = sphi %s2338_s18, %s2819_s18   ;;  %s2275_s17 = sphi %s2336_s17, %s2827_s17   ;;  %s2271_s16 = sphi %s2334_s16, %s2826_s16   ;;  %s2267_s15 = sphi %s2332_s15, %s2825_s15   ;;  %s2263_s14 = sphi %s2330_s14, %s2824_s14   ;;  %s2259_s13 = sphi %s2328_s13, %s2823_s13   ;;  %s2255_s12 = sphi %s2326_s12, %s2822_s12  }
   0xe   : > { %2796 = sst [smem:[#allocation13_spill]] %s2287_s20  ;;  %s1451_s24 = sadd.s32 4294967294, %s2295_s22  }
   0xf   : > { %p52_p0 = scmp.ne.s32.totalorder %s2271_s16, %s2267_s15  ;;  %p2382_p1 = scmp.eq.s32.totalorder %s1450_s23, 0 }
  0x10   : > { %p119_p2 = scmp.ne.s32.totalorder %s2263_s14, %s2259_s13  ;;  %p120_p4 = scmp.eq.s32.totalorder %s1450_s23, 3 }
  0x11   : > { %s2797_s25 = scalar_select %p2382_p1, 1, 0 }
  0x12   : > { %p2391_p3 = por %p2382_p1, %p52_p0  ;;  %p125_p5 = scmp.ne.s32.totalorder %s2259_s13, %s2255_s12 }
  0x13   : > { %p126_p6 = scmp.eq.s32.totalorder %s1451_s24, 3  ;;  %p2397_p7 = por %p120_p4, %p119_p2 }
  0x14   : > { %s2798_s27 = scalar_select %p2391_p3, 1, 0 }
  0x15   : > { %s2799_s28 = scalar_select %p2397_p7, 1, 0 }
  0x16   : > { %p1452_p8 = scmp.ge.s32.totalorder %s2295_s22, 1  ;;  %p2402_p9 = por %p126_p6, %p125_p5 }
  0x17   : > { %p133_p10 = scmp.lt.s32.totalorder %s2295_s22, 5  ;;  %s2297_s4 = smov [#allocation5]  }
  0x18   : > { %s2800_s29 = scalar_select %p2402_p9, 1, 0 }
  0x19   : > { %p2407_p11 = pnand %p1452_p8, %p133_p10  ;;  %s145_s5 = sshll.u32 %s2297_s4, 4  ;;  %s146_s5 = int_to_ptr.vmem [resolvable:$true] %s145_s5 }
  0x1a   : > { %2801 = sst [smem:[#allocation14_spill]] %s2800_s29  ;;  %s2298_s7 = smov [#allocation7]  }
  0x1b   : > { %s2802_s30 = scalar_select %p2407_p11, 1, 0 }
  0x1c   : > { %p1871_p12 = pneg %p2407_p11  ;;  %s159_s8 = sshll.u32 %s2298_s7, 4  ;;  %s2419_s8 = int_to_ptr.vmem [resolvable:$true] %s159_s8 }
  0x1d   : > { %s2804_s1 = sld [smem:[#allocation16_spill]] }
  0x1e   : > { %p2415_p13 = pnand %p1871_p12, %p2382_p1 }
  0x20   : > { %p2085_p2 = pneg %p2415_p13 }
  0x23   : > { %s2083_s11 = scalar_lea.hbm %s2804_s1, 16384 }
  0x24   : > { %p2084_p0 = scmp.ne.s32.totalorder %s2804_s1, %s2083_s11  ;;  %p2090_p6 = scmp.lt.u32.totalorder %s2083_s11, %s2804_s1 }
  0x26   : > { %p2086_p4 = pnand %p2085_p2, %p2084_p0 }
  0x28   : > { %p2087_p5 = pneg %p2086_p4 }
  0x2a   : > { %p2092_p8 = pnand %p2090_p6, %p2087_p5 }
  0x2c   : > { %2095 = shalt.err (!%p2092_p8)
}
  0x2d   : > { %s2096_s7 = scalar_lea.vmem %s146_s5, 16384  ;;  %p2104_p7 = scmp.lt.s32.totalorder %s146_s5, %s146_s5 }
  0x2e   : > { %p2097_p10 = scmp.ne.s32.totalorder %s146_s5, %s2096_s7  ;;  %p2105_p1 = scmp.lt.s32.totalorder %s2096_s7, %s2096_s7 }
  0x30   : > { %p2099_p12 = pnand %p2097_p10, %p2085_p2  ;;  %p2106_p3 = por %p2105_p1, %p2104_p7 }
  0x32   : > { %p2100_p9 = pneg %p2099_p12 }
  0x34   : > { %p2107_p11 = pnand %p2106_p3, %p2100_p9 }
  0x36   : > { %2110 = shalt.err (!%p2107_p11)
}
  0x37   : > { %s2789_s9 = smov 64   ;;  %s2790_s10 = smov 4  }
  0x38   : > { %1874 = dma.hbm_to_vmem [thread:$0]  (!%p2415_p13), %s2804_s1, 16384, %s146_s5, [#allocation6], %s2789_s9, %s2789_s9, %s2790_s10  }
  0x39   : > { %s2805_s2 = sld [smem:[#allocation17_spill]] }
  0x3f   : > { %s2111_s4 = scalar_lea.hbm %s2805_s2, 16 }
  0x40   : > { %p2112_p1 = scmp.ne.s32.totalorder %s2805_s2, %s2111_s4  ;;  %p2118_p9 = scmp.lt.u32.totalorder %s2111_s4, %s2805_s2 }
  0x42   : > { %p2114_p3 = pnand %p2112_p1, %p2085_p2 }
  0x44   : > { %p2115_p7 = pneg %p2114_p3 }
  0x46   : > { %p2120_p11 = pnand %p2118_p9, %p2115_p7 }
  0x48   : > { %2123 = shalt.err (!%p2120_p11)
}
  0x49   : > { %s2124_s5 = scalar_lea.vmem %s2419_s8, 16  ;;  %s2131_s26 = scalar_lea.vmem %s2419_s8, 32 }
  0x4a   : > { %p2125_p0 = scmp.ne.s32.totalorder %s2419_s8, %s2124_s5  ;;  %p2132_p6 = scmp.lt.s32.totalorder %s2419_s8, %s2419_s8 }
  0x4b   : > { %p2133_p8 = scmp.lt.s32.totalorder %s2131_s26, %s2124_s5 }
  0x4c   : > { %p2127_p4 = pnand %p2125_p0, %p2085_p2 }
  0x4d   : > { %p2134_p10 = por %p2133_p8, %p2132_p6 }
  0x4e   : > { %p2128_p5 = pneg %p2127_p4 }
  0x50   : > { %p2135_p12 = pnand %p2134_p10, %p2128_p5 }
  0x52   : > { %2138 = shalt.err (!%p2135_p12)
}
  0x53   : > { %1877 = dma.hbm_to_vmem [thread:$0]  (!%p2415_p13), %s2805_s2, 16, %s2419_s8, [#allocation6]  }
  0x54   : > { %s29_s11 = sadd.s32 1, %s2287_s20  ;;  %s32_s15 = sadd.s32 1, %s2291_s21 }
  0x55   : > { %p30_p2 = scmp.ge.s32.totalorder %s29_s11, 2  ;;  %s39_s6 = sadd.s32 1, %s2275_s17 }
  0x56   : > { %p46_p1 = scmp.ne.s32.totalorder %s2275_s17, %s2271_s16  ;;  %p47_p3 = scmp.eq.s32.totalorder %s2295_s22, 0 }
  0x57   : > { %s2831_s11 = smov (%p30_p2, %s29_s11), 0  ;;  %s2833_s15 = smov (!%p30_p2, %s32_s15), %s2291_s21 }
  0x58   : > { %2806 = sst [smem:[#allocation15_spill]] %s2831_s11  ;;  %p2481_p7 = por %p47_p3, %p46_p1 }
  0x59   : > { %s105_s24 = ssub.s32 %s2287_s20, %s2831_s11  ;;  %p34_p13 = scmp.ge.s32.totalorder %s2833_s15, 2 }
  0x5a   : > { %p1888_p9 = scmp.lt.s32.totalorder %s2295_s22, 4  ;;  %s170_s8 = sand.u32 1, %s2275_s17  }
  0x5b   : > { %s1857_s4 = smul.u32 1920, %s2291_s21  ;;  %s2835_s15 = smov (%p34_p13, %s2833_s15), 0 }
  0x5c   : > { %s1856_s7 = smul.u32 120, %s170_s8  ;;  %s36_s5 = ssub.s32 %s2291_s21, %s2835_s15 }
  0x5d   : > { %s2497_s29 = scalar_lea.hbm %s2778_s0, %s1857_s4  ;;  %p37_p11 = scmp.eq.s32.totalorder %s36_s5, 0 }
  0x5e   : > { %s106_s9 = sor.u32 %s105_s24, %s36_s5  ;;  %s2808_s1 = sadd.s32 1, %s2263_s14 }
  0x5f   : > { %p107_p0 = scmp.eq.s32.totalorder %s106_s9, 0  ;;  %s174_s11 = scalar_lea.vmem [#allocation2], %s1856_s7 }
  0x60   : > { %s2500_s10 = scalar_select %p37_p11, %s2275_s17, %s39_s6  }
  0x61   : > { %s2505_s2 = scalar_select %p107_p0, %s2263_s14, %s2808_s1  }
  0x62   : > { %s181_s20 = sshll.u32 %s174_s11, 4  ;;  %p2511_p4 = pnand %p1888_p9, %p2481_p7  ;;  %s2515_s20 = int_to_ptr.vmem [resolvable:$true] %s181_s20 }
  0x63   : > { %s2517_s24 = scalar_lea.sflag [#allocation3], %s170_s8  ;;  %s2139_s9 = scalar_lea.hbm %s2497_s29, 1920 }
  0x64   : > { %p2140_p5 = scmp.ne.s32.totalorder %s2497_s29, %s2139_s9  ;;  %p2141_p6 = pneg %p2511_p4 }
  0x65   : > { %s2144_s6 = scalar_lea.hbm %s2778_s0, 3840  ;;  %p2145_p12 = scmp.lt.u32.totalorder %s2497_s29, %s2778_s0 }
  0x66   : > { %p2142_p8 = pnand %p2141_p6, %p2140_p5  ;;  %p2146_p2 = scmp.lt.u32.totalorder %s2144_s6, %s2139_s9 }
  0x67   : > { %p2148_p3 = scmp.lt.u32.totalorder %s2139_s9, %s2497_s29 }
  0x68   : > { %p2143_p10 = pneg %p2142_p8  ;;  %p2147_p1 = por %p2146_p2, %p2145_p12 }
  0x6a   : > { %p2149_p7 = por %p2148_p3, %p2147_p1 }
  0x6c   : > { %p2150_p13 = pnand %p2149_p7, %p2143_p10 }
  0x6e   : > { %2153 = shalt.err (!%p2150_p13)
}
  0x6f   : > { %s2154_s8 = scalar_lea.vmem %s2515_s20, 1920  ;;  %s2301_s7 = smov [#allocation2]  }
  0x70   : > { %p2155_p9 = scmp.ne.s32.totalorder %s2515_s20, %s2154_s8  ;;  %s2159_s5 = sshll.u32 %s2301_s7, 4  ;;  %s2160_s5 = int_to_ptr.vmem [resolvable:$false] %s2159_s5 }
  0x71   : > { %s2161_s12 = scalar_lea.vmem %s2160_s5, 3840  ;;  %p2162_p5 = scmp.lt.s32.totalorder %s2515_s20, %s2160_s5 }
  0x72   : > { %p2157_p11 = pnand %p2155_p9, %p2141_p6  ;;  %p2163_p8 = scmp.lt.s32.totalorder %s2161_s12, %s2154_s8 }
  0x74   : > { %p2158_p0 = pneg %p2157_p11  ;;  %p2164_p12 = por %p2163_p8, %p2162_p5 }
  0x76   : > { %p2165_p2 = pnand %p2164_p12, %p2158_p0 }
  0x78   : > { %2168 = shalt.err (!%p2165_p2)
}
  0x79   : > { %s2810_s9 = smov 4   ;;  %s2811_s1 = smov 64  }
  0x7a   : > { %1881 = dma.hbm_to_vmem [thread:$0]  (!%p2511_p4), %s2497_s29, 1920, %s2515_s20, %s2517_s24, %s2811_s1, %s2811_s1, %s2810_s9  }
  0x7b   : > { %p2812_p6 = scmp.ne.s32.totalorder %s2802_s30, 0 }
  0x7c   : > { %s195_s11 = sand.u32 (!%p2812_p6), 1, %s2271_s16   ;;  %p2813_p10 = scmp.ne.s32.totalorder (!%p2812_p6), %s2798_s27, 0 }
  0x7d   : > { %193 = sbr.rel (%p2812_p6) target bundleno = 465 (0x1d1), region = 32  ;;  %s196_s23 = scalar_lea.sflag (!%p2812_p6), [#allocation3], %s195_s11 }
  0x7e   : > { %s2551_s6 = smul.u32 (!%p2812_p6), 120, %s195_s11 }
  0x80   : > { %s199_s4 = scalar_lea.vmem (!%p2812_p6), [#allocation2], %s2551_s6 }
  0x84   : > { %2242 = dma.done.wait (%p2813_p10), %s196_s23, 1920  }
  0x85   : > { %2244 = vsyncadd (%p2813_p10), %s196_s23, 4294965376  ;;  %p2814_p1 = scmp.ne.s32.totalorder %s2797_s25, 0 }
  0x87   : > { %2246 = dma.done.wait (%p2814_p1), [#allocation6], 16400  }
  0x88   : > { %2248 = vsyncadd (%p2814_p1), [#allocation6], 4294950896  ;;  %s1694_s20 = sshll.u32 %s2279_s18, 9  ;;  %s1461_s25 = sshll.u32 %s2279_s18, 2 }
  0x89   : > { %s2563_s30 = scalar_lea.vmem [#allocation5], %s1694_s20  ;;  %s2598_s27 = scalar_lea.vmem %s199_s4, %s1461_s25 [#allocation2] }
  0x8a   : > { %v1987_v0 = vld [vmem:[%s2563_s30 + $0x40] sm:$0xff]   ;;  %v1991_v4 = vld [vmem:[%s2563_s30 + $0x48] sm:$0xff]   ;;  %v1995_v8 = vld [vmem:[%s2563_s30 + $0x50] sm:$0xff]   ;;  %s227_s29 = sand.u32 1, %s2259_s13   ;;  %s1689_s8 = sshll.u32 %s2279_s18, 1 }
  0x8b   : > { %v1988_v1 = vld [vmem:[%s2563_s30 + $0xc0] sm:$0xff]   ;;  %1696 = vmatprep.subr.bf16.mxu0 %v1987_v0  ;;  %v1992_v5 = vld [vmem:[%s2563_s30 + $0xc8] sm:$0xff]   ;;  %v1996_v9 = vld [vmem:[%s2563_s30 + $0xd0] sm:$0xff]   ;;  %s1460_s26 = sshll.u32 %s227_s29, 7  ;;  %s1690_s7 = sshll.u32 %s2283_s19, 5 }
  0x8c   : > { %v1989_v2 = vld [vmem:[%s2563_s30] sm:$0xff]   ;;  %1736 = vmatprep.subr.bf16.mxu1 %v1988_v1  ;;  %v1993_v6 = vld [vmem:[%s2563_s30 + $0x8] sm:$0xff]   ;;  %v1997_v10 = vld [vmem:[%s2563_s30 + $0x10] sm:$0xff]   ;;  %s2673_s24 = scalar_lea.vmem [#allocation8], %s1460_s26  ;;  %s1318_s5 = sadd.s32 %s1690_s7, %s1689_s8 }
  0x8d   : > { %v1990_v3 = vld [vmem:[%s2563_s30 + $0x80] sm:$0xff]   ;;  %1697 = vmatpush3.bf16.msra.mxu0 %v1989_v2  ;;  %v1994_v7 = vld [vmem:[%s2563_s30 + $0x88] sm:$0xff]   ;;  %v1998_v11 = vld [vmem:[%s2563_s30 + $0x90] sm:$0xff]   ;;  %s1691_s18 = sshll.u32 %s1318_s5, 7  ;;  %s1321_s19 = sshll.u32 %s2673_s24, 4  ;;  %s2711_s19 = int_to_ptr.vmem [resolvable:$true] %s1321_s19 }
  0x8e   : > { %1737 = vmatpush3.bf16.msra.mxu1 %v1990_v3  ;;  %1698 = vmatprep.subr.bf16.mxu0 %v1991_v4  ;;  %v1999_v12 = vld [vmem:[%s2563_s30 + $0x58] sm:$0xff]   ;;  %v2003_v16 = vld [vmem:[%s2563_s30 + $0x60] sm:$0xff]   ;;  %v2007_v20 = vld [vmem:[%s2563_s30 + $0x68] sm:$0xff]   ;;  %s2709_s1 = scalar_lea.hbm %s2781_s3, %s1691_s18  ;;  %s2717_s11 = scalar_lea.sflag [#allocation4], %s227_s29 }
  0x8f   : > { %1738 = vmatprep.subr.bf16.mxu1 %v1992_v5  ;;  %v2000_v13 = vld [vmem:[%s2563_s30 + $0xd8] sm:$0xff]   ;;  %v2004_v17 = vld [vmem:[%s2563_s30 + $0xe0] sm:$0xff]   ;;  %v2008_v21 = vld [vmem:[%s2563_s30 + $0xe8] sm:$0xff]   ;;  %s2169_s6 = scalar_lea.vmem %s2711_s19, 2048  ;;  %p2815_p3 = scmp.ne.s32.totalorder %s2799_s28, 0 }
  0x90   : > { %v2001_v14 = vld [vmem:[%s2563_s30 + $0x18] sm:$0xff]   ;;  %v2005_v18 = vld [vmem:[%s2563_s30 + $0x20] sm:$0xff]   ;;  %v2009_v22 = vld [vmem:[%s2563_s30 + $0x28] sm:$0xff]   ;;  %p2170_p4 = scmp.ne.s32.totalorder %s2711_s19, %s2169_s6  ;;  %s2302_s23 = smov [#allocation8]  }
  0x91   : > { %1699 = vmatpush3.bf16.msra.mxu0 %v1993_v6  ;;  %v2002_v15 = vld [vmem:[%s2563_s30 + $0x98] sm:$0xff]   ;;  %v2006_v19 = vld [vmem:[%s2563_s30 + $0xa0] sm:$0xff]   ;;  %v2010_v23 = vld [vmem:[%s2563_s30 + $0xa8] sm:$0xff]   ;;  %s2173_s4 = sshll.u32 %s2302_s23, 4  ;;  %s2174_s4 = int_to_ptr.vmem [resolvable:$false] %s2173_s4 }
  0x92   : > { %1739 = vmatpush3.bf16.msra.mxu1 %v1994_v7  ;;  %1700 = vmatprep.subr.bf16.mxu0 %v1995_v8  ;;  %v2011_v24 = vld [vmem:[%s2563_s30 + $0x70] sm:$0xff]   ;;  %v2015_v28 = vld [vmem:[%s2563_s30 + $0x78] sm:$0xff]   ;;  %v2019_v32 = vld [vmem:[%s2598_s27 + $0x28] sm:$0xff]   ;;  %p2171_p7 = pnand %p2170_p4, %p2815_p3  ;;  %s2175_s20 = scalar_lea.vmem %s2174_s4, 4096 }
  0x93   : > { %1740 = vmatprep.subr.bf16.mxu1 %v1996_v9  ;;  %v2012_v25 = vld [vmem:[%s2563_s30 + $0xf0] sm:$0xff]   ;;  %v2016_v29 = vld [vmem:[%s2563_s30 + $0xf8] sm:$0xff]   ;;  %668 = vmatprep.mubr.bf16.mxu0 %v2019_v32  ;;  %v2021_v34 = vld [vmem:[%s2598_s27] sm:$0xff]   ;;  %p2176_p9 = scmp.lt.s32.totalorder %s2711_s19, %s2174_s4  ;;  %p2177_p11 = scmp.lt.s32.totalorder %s2175_s20, %s2169_s6 }
  0x94   : > { %v2013_v26 = vld [vmem:[%s2563_s30 + $0x30] sm:$0xff]   ;;  %v2017_v30 = vld [vmem:[%s2563_s30 + $0x38] sm:$0xff]   ;;  %v2022_v35 = vld [vmem:[%s2598_s27 + $0x4] sm:$0xff]   ;;  %p2172_p13 = pneg %p2171_p7 }
  0x95   : > { %1701 = vmatpush3.bf16.msra.mxu0 %v1997_v10  ;;  %v2014_v27 = vld [vmem:[%s2563_s30 + $0xb0] sm:$0xff]   ;;  %v2018_v31 = vld [vmem:[%s2563_s30 + $0xb8] sm:$0xff]   ;;  %v2023_v36 = vld [vmem:[%s2563_s30 + $0x140] sm:$0xff]   ;;  %p2178_p0 = por %p2177_p11, %p2176_p9 }
  0x96   : > { %1741 = vmatpush3.bf16.msra.mxu1 %v1998_v11  ;;  %1702 = vmatprep.subr.bf16.mxu0 %v1999_v12  ;;  %v2020_v33 = vld [vmem:[%s2598_s27 + $0x2c] sm:$0xff]   ;;  %v2024_v37 = vld [vmem:[%s2563_s30 + $0x1c0] sm:$0xff]   ;;  %v2032_v45 = vld [vmem:[%s2598_s27 + $0x34] sm:$0xff]  }
  0x97   : > { %1742 = vmatprep.subr.bf16.mxu1 %v2000_v13  ;;  %733 = vmatprep.mubr.bf16.mxu1 %v2020_v33  ;;  %v2025_v38 = vld [vmem:[%s2563_s30 + $0x100] sm:$0xff]   ;;  %v2027_v40 = vld [vmem:[%s2563_s30 + $0x148] sm:$0xff]   ;;  %v2031_v44 = vld [vmem:[%s2598_s27 + $0x30] sm:$0xff]   ;;  %p2179_p5 = pnand %p2178_p0, %p2172_p13 }
  0x98   : > { %v2026_v39 = vld [vmem:[%s2563_s30 + $0x180] sm:$0xff]   ;;  %v2028_v41 = vld [vmem:[%s2563_s30 + $0x1c8] sm:$0xff]   ;;  %v2035_v48 = vld [vmem:[%s2563_s30 + $0x150] sm:$0xff]  }
  0x99   : > { %1703 = vmatpush3.bf16.msra.mxu0 %v2001_v14  ;;  %v2029_v42 = vld [vmem:[%s2563_s30 + $0x108] sm:$0xff]   ;;  %v2036_v49 = vld [vmem:[%s2563_s30 + $0x1d0] sm:$0xff]   ;;  %v2039_v52 = vld [vmem:[%s2563_s30 + $0x158] sm:$0xff]  }
  0x9a   : > { %1743 = vmatpush3.bf16.msra.mxu1 %v2002_v15  ;;  %1704 = vmatprep.subr.bf16.mxu0 %v2003_v16  ;;  %v2030_v43 = vld [vmem:[%s2563_s30 + $0x188] sm:$0xff]   ;;  %v2037_v50 = vld [vmem:[%s2563_s30 + $0x110] sm:$0xff]   ;;  %v2040_v53 = vld [vmem:[%s2563_s30 + $0x1d8] sm:$0xff]  }
  0x9b   : > { %1744 = vmatprep.subr.bf16.mxu1 %v2004_v17  ;;  %v2033_v46 = vld [vmem:[%s2598_s27 + $0x8] sm:$0xff]   ;;  %v2038_v51 = vld [vmem:[%s2563_s30 + $0x190] sm:$0xff]   ;;  %v2041_v54 = vld [vmem:[%s2563_s30 + $0x118] sm:$0xff]  }
  0x9c   : > { %v2034_v47 = vld [vmem:[%s2598_s27 + $0xc] sm:$0xff]   ;;  %v2042_v55 = vld [vmem:[%s2563_s30 + $0x198] sm:$0xff]   ;;  %v2047_v60 = vld [vmem:[%s2563_s30 + $0x160] sm:$0xff]  }
  0x9d   : > { %1705 = vmatpush3.bf16.msra.mxu0 %v2005_v18  ;;  %v2043_v56 = vld [vmem:[%s2598_s27 + $0x38] sm:$0xff]   ;;  %v2045_v58 = vld [vmem:[%s2598_s27 + $0x10] sm:$0xff]   ;;  %v2048_v61 = vld [vmem:[%s2563_s30 + $0x1e0] sm:$0xff]  }
  0x9e   : > { %1745 = vmatpush3.bf16.msra.mxu1 %v2006_v19  ;;  %1706 = vmatprep.subr.bf16.mxu0 %v2007_v20  ;;  %v2044_v57 = vld [vmem:[%s2598_s27 + $0x3c] sm:$0xff]   ;;  %v2046_v59 = vld [vmem:[%s2598_s27 + $0x14] sm:$0xff]   ;;  %v2051_v0 = vld [vmem:[%s2563_s30 + $0x168] sm:$0xff]  }
  0x9f   : > { %1746 = vmatprep.subr.bf16.mxu1 %v2008_v21  ;;  %v2049_v62 = vld [vmem:[%s2563_s30 + $0x120] sm:$0xff]   ;;  %v2052_v1 = vld [vmem:[%s2563_s30 + $0x1e8] sm:$0xff]   ;;  %v2057_v6 = vld [vmem:[%s2598_s27 + $0x18] sm:$0xff]  }
  0xa0   : > { %v2050_v63 = vld [vmem:[%s2563_s30 + $0x1a0] sm:$0xff]   ;;  %v2053_v2 = vld [vmem:[%s2563_s30 + $0x128] sm:$0xff]   ;;  %v2059_v8 = vld [vmem:[%s2563_s30 + $0x170] sm:$0xff]  }
  0xa1   : > { %1707 = vmatpush3.bf16.msra.mxu0 %v2009_v22  ;;  %v2054_v3 = vld [vmem:[%s2563_s30 + $0x1a8] sm:$0xff]   ;;  %v2055_v4 = vld [vmem:[%s2598_s27 + $0x40] sm:$0xff]   ;;  %v2060_v9 = vld [vmem:[%s2563_s30 + $0x1f0] sm:$0xff]  }
  0xa2   : > { %1747 = vmatpush3.bf16.msra.mxu1 %v2010_v23  ;;  %1708 = vmatprep.subr.bf16.mxu0 %v2011_v24  ;;  %v2056_v5 = vld [vmem:[%s2598_s27 + $0x44] sm:$0xff]   ;;  %v2058_v7 = vld [vmem:[%s2598_s27 + $0x1c] sm:$0xff]   ;;  %v2061_v10 = vld [vmem:[%s2563_s30 + $0x130] sm:$0xff]  }
  0xa3   : > { %1748 = vmatprep.subr.bf16.mxu1 %v2012_v25  ;;  %v2062_v11 = vld [vmem:[%s2563_s30 + $0x1b0] sm:$0xff]   ;;  %v2063_v12 = vld [vmem:[%s2563_s30 + $0x178] sm:$0xff]   ;;  %v2069_v18 = vld [vmem:[%s2598_s27 + $0x28] sm:$0xff]  }
  0xa4   : > { %v2064_v13 = vld [vmem:[%s2563_s30 + $0x1f8] sm:$0xff]   ;;  %v2067_v16 = vld [vmem:[%s2598_s27 + $0x50] sm:$0xff]   ;;  %v2075_v24 = vld [vmem:[%s2598_s27 + $0x60] sm:$0xff]  }
  0xa5   : > { %1709 = vmatpush3.bf16.msra.mxu0 %v2013_v26  ;;  %v2065_v14 = vld [vmem:[%s2563_s30 + $0x138] sm:$0xff]   ;;  %v2070_v19 = vld [vmem:[%s2598_s27 + $0x2c] sm:$0xff]   ;;  %v2076_v25 = vld [vmem:[%s2598_s27 + $0x64] sm:$0xff]  }
  0xa6   : > { %1749 = vmatpush3.bf16.msra.mxu1 %v2014_v27  ;;  %1710 = vmatprep.subr.bf16.mxu0 %v2015_v28  ;;  %v2066_v15 = vld [vmem:[%s2563_s30 + $0x1b8] sm:$0xff]   ;;  %v2073_v22 = vld [vmem:[%s2598_s27 + $0x30] sm:$0xff]   ;;  %v2079_v28 = vld [vmem:[%s2598_s27 + $0x68] sm:$0xff]  }
  0xa7   : > { %1750 = vmatprep.subr.bf16.mxu1 %v2016_v29  ;;  %v2068_v17 = vld [vmem:[%s2598_s27 + $0x54] sm:$0xff]   ;;  %v2072_v21 = vld [vmem:[%s2598_s27 + $0x5c] sm:$0xff]   ;;  %v2080_v29 = vld [vmem:[%s2598_s27 + $0x6c] sm:$0xff]  }
  0xa8   : > { %v2071_v20 = vld [vmem:[%s2598_s27 + $0x58] sm:$0xff]  }
  0xa9   : > { %1711 = vmatpush3.bf16.msra.mxu0 %v2017_v30  ;;  %v2074_v23 = vld [vmem:[%s2598_s27 + $0x34] sm:$0xff]   ;;  %v2078_v27 = vld [vmem:[%s2598_s27 + $0x3c] sm:$0xff]  }
  0xaa   : > { %1751 = vmatpush3.bf16.msra.mxu1 %v2018_v31  ;;  %1776 = vmatprep.subr.bf16.mxu0 %v2023_v36  ;;  %v2077_v26 = vld [vmem:[%s2598_s27 + $0x38] sm:$0xff]   ;;  %v2081_v30 = vld [vmem:[%s2598_s27 + $0x40] sm:$0xff]  }
  0xab   : > { %1816 = vmatprep.subr.bf16.mxu1 %v2024_v37  ;;  %v2082_v31 = vld [vmem:[%s2598_s27 + $0x44] sm:$0xff]  }
  0xac   : > { %669 = vmatmul.mubr.bf16.vlgmr.msra.gmra.mrb[0].mxu0 %v2021_v34  ;;  %v2667_v34 = vld [vmem:[#allocation7] ss:$0 sm:$0xff] }
  0xad   : > { %734 = vmatmul.mubr.bf16.vlgmr.msra.gmra.mrb[0].mxu1 %v2022_v35  ;;  %1777 = vmatpush3.bf16.msra.mxu0 %v2025_v38 }
  0xae   : > { %1817 = vmatpush3.bf16.msra.mxu1 %v2026_v39  ;;  %1778 = vmatprep.subr.bf16.mxu0 %v2027_v40 }
  0xaf   : > { %1818 = vmatprep.subr.bf16.mxu1 %v2028_v41  ;;  %676 = vmatprep.mubr.bf16.mxu0 %v2031_v44 }
  0xb0   : > { %741 = vmatprep.mubr.bf16.mxu1 %v2032_v45 }
  0xb1   : > { %1779 = vmatpush3.bf16.msra.mxu0 %v2029_v42 }
  0xb2   : > { %1819 = vmatpush3.bf16.msra.mxu1 %v2030_v43  ;;  %1780 = vmatprep.subr.bf16.mxu0 %v2035_v48 }
  0xb3   : > { %1820 = vmatprep.subr.bf16.mxu1 %v2036_v49 }
  0xb4   : > { %677 = vmatmul.mubr.bf16.gmra.mrb[4].mxu0 %v2033_v46 }
  0xb5   : > { %742 = vmatmul.mubr.bf16.gmra.mrb[4].mxu1 %v2034_v47  ;;  %1781 = vmatpush3.bf16.msra.mxu0 %v2037_v50 }
  0xb6   : > { %1821 = vmatpush3.bf16.msra.mxu1 %v2038_v51  ;;  %1782 = vmatprep.subr.bf16.mxu0 %v2039_v52 }
  0xb7   : > { %1822 = vmatprep.subr.bf16.mxu1 %v2040_v53  ;;  %684 = vmatprep.mubr.bf16.mxu0 %v2043_v56 }
  0xb8   : > { %749 = vmatprep.mubr.bf16.mxu1 %v2044_v57 }
  0xb9   : > { %1783 = vmatpush3.bf16.msra.mxu0 %v2041_v54 }
  0xba   : > { %1823 = vmatpush3.bf16.msra.mxu1 %v2042_v55  ;;  %1784 = vmatprep.subr.bf16.mxu0 %v2047_v60 }
  0xbb   : > { %1824 = vmatprep.subr.bf16.mxu1 %v2048_v61 }
  0xbc   : > { %685 = vmatmul.mubr.bf16.gmra.mrb[8].mxu0 %v2045_v58 }
  0xbd   : > { %750 = vmatmul.mubr.bf16.gmra.mrb[8].mxu1 %v2046_v59  ;;  %1785 = vmatpush3.bf16.msra.mxu0 %v2049_v62 }
  0xbe   : > { %1825 = vmatpush3.bf16.msra.mxu1 %v2050_v63  ;;  %1786 = vmatprep.subr.bf16.mxu0 %v2051_v0 }
  0xbf   : > { %1826 = vmatprep.subr.bf16.mxu1 %v2052_v1  ;;  %692 = vmatprep.mubr.bf16.mxu0 %v2055_v4 }
  0xc0   : > { %757 = vmatprep.mubr.bf16.mxu1 %v2056_v5 }
  0xc1   : > { %1787 = vmatpush3.bf16.msra.mxu0 %v2053_v2 }
  0xc2   : > { %1827 = vmatpush3.bf16.msra.mxu1 %v2054_v3  ;;  %1788 = vmatprep.subr.bf16.mxu0 %v2059_v8 }
  0xc3   : > { %1828 = vmatprep.subr.bf16.mxu1 %v2060_v9 }
  0xc4   : > { %693 = vmatmul.mubr.bf16.gmra.mrb[12].mxu0 %v2057_v6 }
  0xc5   : > { %758 = vmatmul.mubr.bf16.gmra.mrb[12].mxu1 %v2058_v7  ;;  %1789 = vmatpush3.bf16.msra.mxu0 %v2061_v10 }
  0xc6   : > { %1829 = vmatpush3.bf16.msra.mxu1 %v2062_v11  ;;  %1790 = vmatprep.subr.bf16.mxu0 %v2063_v12 }
  0xc7   : > { %1830 = vmatprep.subr.bf16.mxu1 %v2064_v13  ;;  %1199 = vmatprep.mubr.bf16.mxu0 %v2067_v16 }
  0xc8   : > { %1264 = vmatprep.mubr.bf16.mxu1 %v2068_v17 }
  0xc9   : > { %1791 = vmatpush3.bf16.msra.mxu0 %v2065_v14 }
  0xca   : > { %1831 = vmatpush3.bf16.msra.mxu1 %v2066_v15 }
  0xcc   : > { %1200 = vmatmul.mubr.bf16.vlgmr.msra.gmra.mrb[16].mxu0 %v2069_v18 }
  0xcd   : > { %1265 = vmatmul.mubr.bf16.vlgmr.msra.gmra.mrb[16].mxu1 %v2070_v19  ;;  %1207 = vmatprep.mubr.bf16.mxu0 %v2071_v20 }
  0xce   : > { %1272 = vmatprep.mubr.bf16.mxu1 %v2072_v21 }
  0xd4   : > { %1208 = vmatmul.mubr.bf16.gmra.mrb[20].mxu0 %v2073_v22 }
  0xd5   : > { %1273 = vmatmul.mubr.bf16.gmra.mrb[20].mxu1 %v2074_v23  ;;  %1215 = vmatprep.mubr.bf16.mxu0 %v2075_v24 }
  0xd6   : > { %1280 = vmatprep.mubr.bf16.mxu1 %v2076_v25 }
  0xdc   : > { %1216 = vmatmul.mubr.bf16.gmra.mrb[24].mxu0 %v2077_v26 }
  0xdd   : > { %1281 = vmatmul.mubr.bf16.gmra.mrb[24].mxu1 %v2078_v27  ;;  %1223 = vmatprep.mubr.bf16.mxu0 %v2079_v28 }
  0xde   : > { %1288 = vmatprep.mubr.bf16.mxu1 %v2080_v29 }
  0xe4   : > { %1224 = vmatmul.mubr.bf16.gmra.mrb[28].mxu0 %v2081_v30 }
  0xe5   : > { %1289 = vmatmul.mubr.bf16.gmra.mrb[28].mxu1 %v2082_v31 }
 0x17f   : > { %v1712_v32 = vpop.f32.mrb[0].mxu0 }
 0x180   : > { %v1752_v33 = vpop.f32.mrb[0].mxu1  ;;  %v1713_v35 = vpop.f32.mrb[1].mxu0 }
 0x181   : > { %v1714_v36 = vadd.f32 %v1713_v35, %v1712_v32  ;;  %v1753_v37 = vpop.f32.mrb[1].mxu1  ;;  %v1715_v38 = vpop.f32.mrb[2].mxu0 }
 0x182   : > { %v1754_v39 = vadd.f32 %v1753_v37, %v1752_v33  ;;  %v1755_v40 = vpop.f32.mrb[2].mxu1  ;;  %v1716_v41 = vpop.f32.mrb[3].mxu0 }
 0x183   : > { %v671_v42 = vadd.f32 %v1714_v36, %v2667_v34  ;;  %v1717_v43 = vadd.f32 %v1716_v41, %v1715_v38  ;;  %v1756_v44 = vpop.f32.mrb[3].mxu1 }
 0x184   : > { %v1757_v45 = vadd.f32 %v1756_v44, %v1755_v40 }
 0x185   : > { %v736_v46 = vadd.f32 %v1754_v39, %v671_v42  ;;  %v674_v47 = vadd.f32 %v1717_v43, %v2667_v34 }
 0x187   : > { %766 = vst [vmem:[%s2673_s24] sm:$0xff] %v736_v46  ;;  %v739_v48 = vadd.f32 %v1757_v45, %v674_v47  ;;  %v1718_v49 = vpop.f32.mrb[4].mxu0 }
 0x188   : > { %v1758_v50 = vpop.f32.mrb[4].mxu1  ;;  %v1719_v51 = vpop.f32.mrb[5].mxu0 }
 0x189   : > { %767 = vst [vmem:[%s2673_s24 + $0x10] sm:$0xff] %v739_v48  ;;  %v1720_v52 = vadd.f32 %v1719_v51, %v1718_v49  ;;  %v1759_v53 = vpop.f32.mrb[5].mxu1  ;;  %v1721_v54 = vpop.f32.mrb[6].mxu0 }
 0x18a   : > { %v1760_v55 = vadd.f32 %v1759_v53, %v1758_v50  ;;  %v1761_v56 = vpop.f32.mrb[6].mxu1  ;;  %v1722_v57 = vpop.f32.mrb[7].mxu0 }
 0x18b   : > { %v679_v58 = vadd.f32 %v1720_v52, %v2667_v34  ;;  %v1723_v59 = vadd.f32 %v1722_v57, %v1721_v54  ;;  %v1762_v60 = vpop.f32.mrb[7].mxu1 }
 0x18c   : > { %v1763_v61 = vadd.f32 %v1762_v60, %v1761_v56 }
 0x18d   : > { %v744_v62 = vadd.f32 %v1760_v55, %v679_v58  ;;  %v682_v63 = vadd.f32 %v1723_v59, %v2667_v34 }
 0x18f   : > { %768 = vst [vmem:[%s2673_s24 + $0x20] sm:$0xff] %v744_v62  ;;  %v747_v0 = vadd.f32 %v1763_v61, %v682_v63  ;;  %v1724_v1 = vpop.f32.mrb[8].mxu0 }
 0x190   : > { %v1764_v2 = vpop.f32.mrb[8].mxu1  ;;  %v1725_v3 = vpop.f32.mrb[9].mxu0 }
 0x191   : > { %769 = vst [vmem:[%s2673_s24 + $0x30] sm:$0xff] %v747_v0  ;;  %v1726_v4 = vadd.f32 %v1725_v3, %v1724_v1  ;;  %v1765_v5 = vpop.f32.mrb[9].mxu1  ;;  %v1727_v6 = vpop.f32.mrb[10].mxu0 }
 0x192   : > { %v1766_v7 = vadd.f32 %v1765_v5, %v1764_v2  ;;  %v1767_v8 = vpop.f32.mrb[10].mxu1  ;;  %v1728_v9 = vpop.f32.mrb[11].mxu0 }
 0x193   : > { %v687_v10 = vadd.f32 %v1726_v4, %v2667_v34  ;;  %v1729_v11 = vadd.f32 %v1728_v9, %v1727_v6  ;;  %v1768_v12 = vpop.f32.mrb[11].mxu1 }
 0x194   : > { %v1769_v13 = vadd.f32 %v1768_v12, %v1767_v8 }
 0x195   : > { %v752_v14 = vadd.f32 %v1766_v7, %v687_v10  ;;  %v690_v15 = vadd.f32 %v1729_v11, %v2667_v34 }
 0x197   : > { %770 = vst [vmem:[%s2673_s24 + $0x40] sm:$0xff] %v752_v14  ;;  %v755_v16 = vadd.f32 %v1769_v13, %v690_v15  ;;  %v1730_v17 = vpop.f32.mrb[12].mxu0 }
 0x198   : > { %v1770_v18 = vpop.f32.mrb[12].mxu1  ;;  %v1731_v19 = vpop.f32.mrb[13].mxu0 }
 0x199   : > { %771 = vst [vmem:[%s2673_s24 + $0x50] sm:$0xff] %v755_v16  ;;  %v1732_v20 = vadd.f32 %v1731_v19, %v1730_v17  ;;  %v1771_v21 = vpop.f32.mrb[13].mxu1  ;;  %v1733_v22 = vpop.f32.mrb[14].mxu0 }
 0x19a   : > { %v1772_v23 = vadd.f32 %v1771_v21, %v1770_v18  ;;  %v1773_v24 = vpop.f32.mrb[14].mxu1  ;;  %v1734_v25 = vpop.f32.mrb[15].mxu0 }
 0x19b   : > { %v695_v26 = vadd.f32 %v1732_v20, %v2667_v34  ;;  %v1735_v27 = vadd.f32 %v1734_v25, %v1733_v22  ;;  %v1774_v28 = vpop.f32.mrb[15].mxu1 }
 0x19c   : > { %v1775_v29 = vadd.f32 %v1774_v28, %v1773_v24 }
 0x19d   : > { %v760_v30 = vadd.f32 %v1772_v23, %v695_v26  ;;  %v698_v31 = vadd.f32 %v1735_v27, %v2667_v34 }
 0x19f   : > { %772 = vst [vmem:[%s2673_s24 + $0x60] sm:$0xff] %v760_v30  ;;  %v763_v32 = vadd.f32 %v1775_v29, %v698_v31  ;;  %v1792_v33 = vpop.f32.mrb[16].mxu0 }
 0x1a0   : > { %v1832_v35 = vpop.f32.mrb[16].mxu1  ;;  %v1793_v36 = vpop.f32.mrb[17].mxu0 }
 0x1a1   : > { %773 = vst [vmem:[%s2673_s24 + $0x70] sm:$0xff] %v763_v32  ;;  %v1794_v37 = vadd.f32 %v1793_v36, %v1792_v33  ;;  %v1833_v38 = vpop.f32.mrb[17].mxu1  ;;  %v1795_v39 = vpop.f32.mrb[18].mxu0 }
 0x1a2   : > { %v1834_v40 = vadd.f32 %v1833_v38, %v1832_v35  ;;  %v1835_v41 = vpop.f32.mrb[18].mxu1  ;;  %v1796_v42 = vpop.f32.mrb[19].mxu0 }
 0x1a3   : > { %v1202_v43 = vadd.f32 %v1794_v37, %v2667_v34  ;;  %v1797_v44 = vadd.f32 %v1796_v42, %v1795_v39  ;;  %v1836_v45 = vpop.f32.mrb[19].mxu1 }
 0x1a4   : > { %v1837_v46 = vadd.f32 %v1836_v45, %v1835_v41 }
 0x1a5   : > { %v1267_v47 = vadd.f32 %v1834_v40, %v1202_v43  ;;  %v1205_v48 = vadd.f32 %v1797_v44, %v2667_v34 }
 0x1a7   : > { %1297 = vst [vmem:[%s2673_s24 + $0x8] sm:$0xff] %v1267_v47  ;;  %v1270_v49 = vadd.f32 %v1837_v46, %v1205_v48  ;;  %v1798_v50 = vpop.f32.mrb[20].mxu0 }
 0x1a8   : > { %v1838_v51 = vpop.f32.mrb[20].mxu1  ;;  %v1799_v52 = vpop.f32.mrb[21].mxu0 }
 0x1a9   : > { %1298 = vst [vmem:[%s2673_s24 + $0x18] sm:$0xff] %v1270_v49  ;;  %v1800_v53 = vadd.f32 %v1799_v52, %v1798_v50  ;;  %v1839_v54 = vpop.f32.mrb[21].mxu1  ;;  %v1801_v55 = vpop.f32.mrb[22].mxu0 }
 0x1aa   : > { %v1840_v56 = vadd.f32 %v1839_v54, %v1838_v51  ;;  %v1841_v57 = vpop.f32.mrb[22].mxu1  ;;  %v1802_v58 = vpop.f32.mrb[23].mxu0 }
 0x1ab   : > { %v1210_v59 = vadd.f32 %v1800_v53, %v2667_v34  ;;  %v1803_v60 = vadd.f32 %v1802_v58, %v1801_v55  ;;  %v1842_v61 = vpop.f32.mrb[23].mxu1 }
 0x1ac   : > { %v1843_v62 = vadd.f32 %v1842_v61, %v1841_v57 }
 0x1ad   : > { %v1275_v63 = vadd.f32 %v1840_v56, %v1210_v59  ;;  %v1213_v0 = vadd.f32 %v1803_v60, %v2667_v34 }
 0x1af   : > { %1299 = vst [vmem:[%s2673_s24 + $0x28] sm:$0xff] %v1275_v63  ;;  %v1278_v1 = vadd.f32 %v1843_v62, %v1213_v0  ;;  %v1804_v2 = vpop.f32.mrb[24].mxu0 }
 0x1b0   : > { %v1844_v3 = vpop.f32.mrb[24].mxu1  ;;  %v1805_v4 = vpop.f32.mrb[25].mxu0 }
 0x1b1   : > { %1300 = vst [vmem:[%s2673_s24 + $0x38] sm:$0xff] %v1278_v1  ;;  %v1806_v5 = vadd.f32 %v1805_v4, %v1804_v2  ;;  %v1845_v6 = vpop.f32.mrb[25].mxu1  ;;  %v1807_v7 = vpop.f32.mrb[26].mxu0 }
 0x1b2   : > { %v1846_v8 = vadd.f32 %v1845_v6, %v1844_v3  ;;  %v1847_v9 = vpop.f32.mrb[26].mxu1  ;;  %v1808_v10 = vpop.f32.mrb[27].mxu0 }
 0x1b3   : > { %v1218_v11 = vadd.f32 %v1806_v5, %v2667_v34  ;;  %v1809_v12 = vadd.f32 %v1808_v10, %v1807_v7  ;;  %v1848_v13 = vpop.f32.mrb[27].mxu1 }
 0x1b4   : > { %v1849_v14 = vadd.f32 %v1848_v13, %v1847_v9 }
 0x1b5   : > { %v1283_v15 = vadd.f32 %v1846_v8, %v1218_v11  ;;  %v1221_v16 = vadd.f32 %v1809_v12, %v2667_v34 }
 0x1b7   : > { %1301 = vst [vmem:[%s2673_s24 + $0x48] sm:$0xff] %v1283_v15  ;;  %v1286_v17 = vadd.f32 %v1849_v14, %v1221_v16  ;;  %v1810_v18 = vpop.f32.mrb[28].mxu0 }
 0x1b8   : > { %v1850_v19 = vpop.f32.mrb[28].mxu1  ;;  %v1811_v20 = vpop.f32.mrb[29].mxu0 }
 0x1b9   : > { %1302 = vst [vmem:[%s2673_s24 + $0x58] sm:$0xff] %v1286_v17  ;;  %v1812_v21 = vadd.f32 %v1811_v20, %v1810_v18  ;;  %v1851_v22 = vpop.f32.mrb[29].mxu1  ;;  %v1813_v23 = vpop.f32.mrb[30].mxu0 }
 0x1ba   : > { %v1852_v24 = vadd.f32 %v1851_v22, %v1850_v19  ;;  %v1853_v25 = vpop.f32.mrb[30].mxu1  ;;  %v1814_v26 = vpop.f32.mrb[31].mxu0 }
 0x1bb   : > { %v1226_v27 = vadd.f32 %v1812_v21, %v2667_v34  ;;  %v1815_v28 = vadd.f32 %v1814_v26, %v1813_v23  ;;  %v1854_v29 = vpop.f32.mrb[31].mxu1 }
 0x1bc   : > { %v1855_v30 = vadd.f32 %v1854_v29, %v1853_v25 }
 0x1bd   : > { %v1291_v31 = vadd.f32 %v1852_v24, %v1226_v27  ;;  %v1229_v32 = vadd.f32 %v1815_v28, %v2667_v34 }
 0x1bf   : > { %1303 = vst [vmem:[%s2673_s24 + $0x68] sm:$0xff] %v1291_v31  ;;  %v1294_v33 = vadd.f32 %v1855_v30, %v1229_v32 }
 0x1c1   : > { %1304 = vst [vmem:[%s2673_s24 + $0x78] sm:$0xff] %v1294_v33 }
 0x1c2   : > { %2182 = shalt.err (!%p2179_p5)
}
 0x1c3   : > { %s2183_s30 = scalar_lea.hbm %s2709_s1, 2048  ;;  %s2187_s29 = scalar_lea.hbm %s2781_s3, 8192 }
 0x1c4   : > { %p2184_p8 = scmp.ne.s32.totalorder %s2709_s1, %s2183_s30  ;;  %p2188_p6 = scmp.lt.u32.totalorder %s2709_s1, %s2781_s3 }
 0x1c5   : > { %p2189_p10 = scmp.lt.u32.totalorder %s2187_s29, %s2183_s30  ;;  %p2191_p4 = scmp.lt.u32.totalorder %s2183_s30, %s2709_s1 }
 0x1c6   : > { %p2185_p12 = pnand %p2184_p8, %p2815_p3 }
 0x1c7   : > { %p2190_p1 = por %p2189_p10, %p2188_p6 }
 0x1c8   : > { %p2186_p2 = pneg %p2185_p12 }
 0x1c9   : > { %p2192_p7 = por %p2191_p4, %p2190_p1 }
 0x1cb   : > { %p2193_p13 = pnand %p2192_p7, %p2186_p2 }
 0x1cd   : > { %2196 = shalt.err (!%p2193_p13)
}
 0x1ce   : > { %s2303_s8 = smov 256   ;;  %s2304_s7 = smov 512  }
 0x1cf   : > { %s2305_s5 = smov 16  }
 0x1d0   : > { %1869 = dma.vmem_to_hbm [thread:$0]  (%p2815_p3), %s2711_s19, 2048, %s2709_s1, %s2717_s11, %s2303_s8, %s2304_s7, %s2305_s5  }
 0x1d1 PF: > { %s2816_s18 = sld [smem:[#allocation12_spill]]  ;;  %s2817_s12 = sld [smem:[#allocation14_spill]] }
 0x1d2   : > { %p1891_p9 = scmp.ge.s32.totalorder %s2295_s22, 2 }
 0x1d7   : > { %s1336_s9 = sand.u32 1, %s2816_s18   ;;  %p2818_p11 = scmp.ne.s32.totalorder %s2817_s12, 0 }
 0x1d8   : > { %s1337_s6 = scalar_lea.sflag [#allocation4], %s1336_s9 }
 0x1d9   : > { %p1883_p0 = pnand %p1891_p9, %p2818_p11 }
 0x1db   : > { %2250 = dma.done.wait (!%p1883_p0), %s1337_s6, 2048  }
 0x1dc   : > { %2252 = vsyncadd (!%p1883_p0), %s1337_s6, 4294965248  ;;  %s20_s22 = sadd.s32 1, %s2295_s22   ;;  %s2819_s18 = sld [smem:[#allocation13_spill]] }
 0x1dd   : > { %p17_p5 = scmp.ge.s32.totalorder %s20_s22, 6   ;;  %s2820_s20 = sld [smem:[#allocation15_spill]] }
 0x1de   : > { %s2821_s28 = smov %s2835_s15  ;;  %s2822_s12 = smov %s2259_s13 }
 0x1df   : > { %s2823_s13 = smov %s2263_s14  ;;  %s2824_s14 = smov %s2505_s2 }
 0x1e0   : > { %s2825_s15 = smov %s2271_s16  ;;  %s2826_s16 = smov %s2275_s17 }
 0x1e1   : > { %s2827_s17 = smov %s2500_s10  ;;  %s2828_s19 = smov %s2291_s21 }
 0x1e2   : > { %s2829_s21 = smov %s2821_s28  ;;  %19 = sbr.rel (!%p17_p5) target bundleno = 13 (0xd), region = 93 }
 0x1e9   :  { %1342 = vsyncpa [#allocation3], 1 }
 0x1ea   :  { %1344 = vsyncpa [#allocation3 + $0x1], 1 }
 0x1eb   :  { %1345 = vsyncpa [#allocation6], 1 }
 0x1ec   :  { %1346 = vsyncpa [#allocation4], 1 }
 0x1ed   :  { %1348 = vsyncpa [#allocation4 + $0x1], 1 }

</bundles_post_ra>
